<compile_context>
chip_gen: v7x
topology: tpu7x:2x2x1
jax: 0.10.0
libtpu: 0.0.40
codegen_flags: <defaults>
</compile_context>

<pallas_src>
import functools

import jax
import jax.numpy as jnp
from jax.experimental import pallas as pl
from jax.experimental.pallas import tpu as pltpu

EPS = 1e-5                      # torch nn.LayerNorm default
VMEM_LIMIT = 32 * 1024 * 1024   # safe scoped-VMEM budget on v5e/v6e/v7x


# ----------------------------------------------------------------------------
# Small helpers
# ----------------------------------------------------------------------------

def _cparams(*sem):
    return pltpu.CompilerParams(dimension_semantics=sem, vmem_limit_bytes=VMEM_LIMIT)


def _row(x):
    return x.reshape(1, -1).astype(jnp.float32)


def _round_up(x, m):
    return ((x + m - 1) // m) * m


def _pick_tile(total, target=256, align=8):
    """Largest divisor of `total` that is a multiple of `align` and <= target (else full)."""
    if total <= align:
        return total
    best = None
    t = align
    while t <= min(total, target):
        if total % t == 0:
            best = t
        t += align
    return best if best is not None else total


def _ln(x, g, b):
    """f32 LayerNorm over the last dim; g, b are (1, D) rows."""
    mu = jnp.mean(x, axis=-1, keepdims=True)
    xc = x - mu
    var = jnp.mean(xc * xc, axis=-1, keepdims=True)
    return xc * jax.lax.rsqrt(var + EPS) * g + b


# ----------------------------------------------------------------------------
# Pallas kernels
# ----------------------------------------------------------------------------

def _embed_kernel(x_ref, g1_ref, b1_ref, w_ref, wb_ref, g2_ref, b2_ref, pe_ref, o_ref):
    """to_embedding: LN -> Linear(+bias) -> LN, plus scaled-sinusoidal PE add, fused."""
    x = x_ref[0].astype(jnp.float32)                                # (TN, Din)
    x = _ln(x, g1_ref[...], b1_ref[...])
    y = jnp.dot(x.astype(jnp.bfloat16), w_ref[...],
                preferred_element_type=jnp.float32) + wb_ref[...]   # (TN, D)
    y = _ln(y, g2_ref[...], b2_ref[...])
    o_ref[0] = y + pe_ref[...]                                      # fold PE add


def _attn_block_kernel(x_ref, g_ref, b_ref, wq_ref, wk_ref, wv_ref, wo_ref, o_ref,
                       *, heads, scale):
    """Full attention block for one batch element: LN -> QKV -> SDPA -> out-proj -> +residual.

    Weights are pre-arranged per head: wq/wk/wv: (H, D, dh), wo: (H, dh, D), so every matmul
    is a plain 2-D MXU dot (no in-kernel transposes / lane slicing).  All heads are processed
    inside one grid step (static unroll), amortizing per-step overhead.
    """
    x = x_ref[0].astype(jnp.float32)                                # (N, D)
    xn = _ln(x, g_ref[...], b_ref[...]).astype(jnp.bfloat16)        # (N, D) bf16 for MXU
    acc = x                                                         # residual
    for h in range(heads):                                          # static unroll
        q = jnp.dot(xn, wq_ref[h], preferred_element_type=jnp.float32)   # (N, dh)
        k = jnp.dot(xn, wk_ref[h], preferred_element_type=jnp.float32)   # (N, dh)
        v = jnp.dot(xn, wv_ref[h], preferred_element_type=jnp.float32)   # (N, dh)
        # scores = q @ k^T without materializing a transposed tile
        s = jax.lax.dot_general(q.astype(jnp.bfloat16), k.astype(jnp.bfloat16),
                                (((1,), (1,)), ((), ())),
                                preferred_element_type=jnp.float32) * scale   # (N, N)
        s = s - jnp.max(s, axis=-1, keepdims=True)
        p = jnp.exp(s)
        p = p * pl.reciprocal(jnp.sum(p, axis=-1, keepdims=True), approx=True)
        oh = jnp.dot(p.astype(jnp.bfloat16), v.astype(jnp.bfloat16),
                     preferred_element_type=jnp.float32)                      # (N, dh)
        acc = acc + jnp.dot(oh.astype(jnp.bfloat16), wo_ref[h],
                            preferred_element_type=jnp.float32)               # (N, D)
    o_ref[0] = acc


def _ff_block_kernel(x_ref, g_ref, b_ref, w1_ref, b1_ref, w2_ref, b2_ref, o_ref):
    """FeedForward block: LN -> Linear -> GELU -> Linear -> +residual, fused per row-tile."""
    x = x_ref[...].astype(jnp.float32)                              # (TM, D)
    xn = _ln(x, g_ref[...], b_ref[...])
    h = jnp.dot(xn.astype(jnp.bfloat16), w1_ref[...],
                preferred_element_type=jnp.float32) + b1_ref[...]   # (TM, mlp)
    h = jax.nn.gelu(h, approximate=False)                           # torch nn.GELU default (erf)
    y = jnp.dot(h.astype(jnp.bfloat16), w2_ref[...],
                preferred_element_type=jnp.float32) + b2_ref[...]   # (TM, D)
    o_ref[...] = y + x


def _head_kernel(x_ref, g_ref, b_ref, w_ref, wb_ref, o_ref):
    """linear_head: LN -> Linear, writing a lane-dense (padded) output slab."""
    x = x_ref[...].astype(jnp.float32)
    xn = _ln(x, g_ref[...], b_ref[...])
    o_ref[...] = jnp.dot(xn.astype(jnp.bfloat16), w_ref[...],
                         preferred_element_type=jnp.float32) + wb_ref[...]


# ----------------------------------------------------------------------------
# Pallas wrappers
# ----------------------------------------------------------------------------

def embed_pallas(x, g1, b1, w, wb, g2, b2, pe):
    B, N, Din = x.shape
    Dout = w.shape[1]
    tn = _pick_tile(N)
    xspec = pl.BlockSpec((1, tn, Din), lambda bi, ni: (bi, ni, 0))
    ospec = pl.BlockSpec((1, tn, Dout), lambda bi, ni: (bi, ni, 0))
    pespec = pl.BlockSpec((tn, Dout), lambda bi, ni: (ni, 0))
    rin = pl.BlockSpec((1, Din), lambda bi, ni: (0, 0))
    rout = pl.BlockSpec((1, Dout), lambda bi, ni: (0, 0))
    wspec = pl.BlockSpec((Din, Dout), lambda bi, ni: (0, 0))        # weight stays VMEM-resident
    return pl.pallas_call(
        _embed_kernel,
        out_shape=jax.ShapeDtypeStruct((B, N, Dout), jnp.float32),
        grid=(B, N // tn),
        in_specs=[xspec, rin, rin, wspec, rout, rout, rout, pespec],
        out_specs=ospec,
        compiler_params=_cparams("parallel", "parallel"),
    )(x, g1, b1, w, wb, g2, b2, pe)


def attn_block_pallas(x3d, g, b, wq3, wk3, wv3, wo3, *, heads, dim_head, scale):
    B, N, D = x3d.shape
    xspec = pl.BlockSpec((1, N, D), lambda i: (i, 0, 0))
    row = pl.BlockSpec((1, D), lambda i: (0, 0))
    w_in = pl.BlockSpec((heads, D, dim_head), lambda i: (0, 0, 0))
    w_out = pl.BlockSpec((heads, dim_head, D), lambda i: (0, 0, 0))
    return pl.pallas_call(
        functools.partial(_attn_block_kernel, heads=heads, scale=scale),
        out_shape=jax.ShapeDtypeStruct((B, N, D), jnp.float32),
        grid=(B,),
        in_specs=[xspec, row, row, w_in, w_in, w_in, w_out],
        out_specs=xspec,
        compiler_params=_cparams("parallel"),
    )(x3d, g, b, wq3, wk3, wv3, wo3)


def ff_block_pallas(x2d, g, b, w1, b1, w2, b2):
    M, D = x2d.shape
    Dh = w1.shape[1]
    tm = _pick_tile(M)
    xspec = pl.BlockSpec((tm, D), lambda i: (i, 0))
    return pl.pallas_call(
        _ff_block_kernel,
        out_shape=jax.ShapeDtypeStruct((M, D), jnp.float32),
        grid=(M // tm,),
        in_specs=[xspec,
                  pl.BlockSpec((1, D), lambda i: (0, 0)),
                  pl.BlockSpec((1, D), lambda i: (0, 0)),
                  pl.BlockSpec((D, Dh), lambda i: (0, 0)),
                  pl.BlockSpec((1, Dh), lambda i: (0, 0)),
                  pl.BlockSpec((Dh, D), lambda i: (0, 0)),
                  pl.BlockSpec((1, D), lambda i: (0, 0))],
        out_specs=xspec,
        compiler_params=_cparams("parallel"),
    )(x2d, g, b, w1, b1, w2, b2)


def head_pallas(x2d, g, b, w_pad, wb_pad):
    M, D = x2d.shape
    Cp = w_pad.shape[1]                                  # already a multiple of 128 (lane-dense)
    tm = _pick_tile(M)
    xspec = pl.BlockSpec((tm, D), lambda i: (i, 0))
    ospec = pl.BlockSpec((tm, Cp), lambda i: (i, 0))
    return pl.pallas_call(
        _head_kernel,
        out_shape=jax.ShapeDtypeStruct((M, Cp), jnp.float32),
        grid=(M // tm,),
        in_specs=[xspec,
                  pl.BlockSpec((1, D), lambda i: (0, 0)),
                  pl.BlockSpec((1, D), lambda i: (0, 0)),
                  pl.BlockSpec((D, Cp), lambda i: (0, 0)),
                  pl.BlockSpec((1, Cp), lambda i: (0, 0))],
        out_specs=ospec,
        compiler_params=_cparams("parallel"),
    )(x2d, g, b, w_pad, wb_pad)


# ----------------------------------------------------------------------------
# Parameter init (deterministic, synthetic) and positional embedding
# ----------------------------------------------------------------------------

def init_params(key, *, input_dim, attn_dim, num_classes, depth, heads, dim_head, mlp_dim):
    keys = jax.random.split(key, 2 + depth * 6)
    std = 0.05

    def w(k, shape):
        # matmul weights stored in bf16 (MXU path); accumulation is f32 inside the kernels
        return (jax.random.normal(k, shape, jnp.float32) * std).astype(jnp.bfloat16)

    c_pad = _round_up(num_classes, 128)                  # lane-dense head output
    head_w = jax.random.normal(keys[1], (attn_dim, num_classes), jnp.float32) * std
    head_w = jnp.pad(head_w, ((0, 0), (0, c_pad - num_classes))).astype(jnp.bfloat16)

    params = {
        # to_embedding: LN(input_dim) -> Linear(input_dim, attn_dim, bias=True) -> LN(attn_dim)
        "emb_g1": _row(jnp.ones(input_dim)), "emb_b1": _row(jnp.zeros(input_dim)),
        "emb_w": w(keys[0], (input_dim, attn_dim)), "emb_wb": _row(jnp.zeros(attn_dim)),
        "emb_g2": _row(jnp.ones(attn_dim)), "emb_b2": _row(jnp.zeros(attn_dim)),
        # ScaledSinusoidalEmbedding scale parameter: ones(1) * attn_dim ** -0.5
        "pe_scale": jnp.float32(attn_dim ** -0.5),
        # head: LN(attn_dim) -> Linear(attn_dim, num_classes, bias=True)  (padded to c_pad lanes)
        "head_g": _row(jnp.ones(attn_dim)), "head_b": _row(jnp.zeros(attn_dim)),
        "head_w": head_w, "head_wb": _row(jnp.zeros(c_pad)),
        "layers": [],
    }
    for l in range(depth):
        kq, kk, kv, ko, k1, k2 = keys[2 + 6 * l: 8 + 6 * l]
        params["layers"].append({
            # Attention: LN -> Linear(attn_dim, 3*inner, no bias) ... Linear(inner, attn_dim, no bias)
            # QKV / out weights stored per-head: equivalent to torch's to_qkv weight chunked and
            # rearranged 'b n (h d) -> b h n d', i.e. wq[h] == W_qkv[:, :inner][:, h*dh:(h+1)*dh],
            # and wo[h] == W_out[h*dh:(h+1)*dh, :].
            "attn_g": _row(jnp.ones(attn_dim)), "attn_b": _row(jnp.zeros(attn_dim)),
            "wq": w(kq, (heads, attn_dim, dim_head)),
            "wk": w(kk, (heads, attn_dim, dim_head)),
            "wv": w(kv, (heads, attn_dim, dim_head)),
            "wo": w(ko, (heads, dim_head, attn_dim)),
            # FeedForward: LN -> Linear(attn_dim, mlp_dim) -> GELU -> Linear(mlp_dim, attn_dim)
            "ff_g": _row(jnp.ones(attn_dim)), "ff_b": _row(jnp.zeros(attn_dim)),
            "ff_w1": w(k1, (attn_dim, mlp_dim)), "ff_b1": _row(jnp.zeros(mlp_dim)),
            "ff_w2": w(k2, (mlp_dim, attn_dim)), "ff_b2": _row(jnp.zeros(attn_dim)),
        })
    return params


def scaled_sinusoidal_pe(seq_len, dim, scale, theta=10000.0):
    half = dim // 2
    freq_seq = jnp.arange(half, dtype=jnp.float32) / half
    inv_freq = theta ** (-freq_seq)                              # (half,)
    pos = jnp.arange(seq_len, dtype=jnp.float32)                 # (N,)
    emb = pos[:, None] * inv_freq[None, :]                       # (N, half)
    emb = jnp.concatenate([jnp.sin(emb), jnp.cos(emb)], axis=-1) # (N, dim)
    return (emb * scale).astype(jnp.float32)


# ----------------------------------------------------------------------------
# Forward pass
# ----------------------------------------------------------------------------

def simple_vit_forward(x, params, *, heads, dim_head, num_classes):
    B, N, Din = x.shape
    D = params["emb_w"].shape[1]

    # positional embedding table is tiny; compute in plain JAX, add inside the embed kernel
    pe = scaled_sinusoidal_pe(N, D, params["pe_scale"])

    # to_embedding (LN -> Linear -> LN) + PE add, fused
    h = embed_pallas(x, params["emb_g1"], params["emb_b1"], params["emb_w"],
                     params["emb_wb"], params["emb_g2"], params["emb_b2"], pe)   # (B, N, D)

    scale = dim_head ** -0.5          # matches F.scaled_dot_product_attention default
    for lp in params["layers"]:
        # Attention block (LN -> QKV -> SDPA -> out-proj -> +residual), one kernel
        h = attn_block_pallas(h, lp["attn_g"], lp["attn_b"], lp["wq"], lp["wk"],
                              lp["wv"], lp["wo"], heads=heads, dim_head=dim_head, scale=scale)
        # FeedForward block (LN -> Lin -> GELU -> Lin -> +residual), one kernel
        h = ff_block_pallas(h.reshape(B * N, D), lp["ff_g"], lp["ff_b"],
                            lp["ff_w1"], lp["ff_b1"], lp["ff_w2"], lp["ff_b2"]).reshape(B, N, D)

    # linear head: LN -> Linear (lane-dense padded output, sliced back to num_classes)
    logits = head_pallas(h.reshape(B * N, D), params["head_g"], params["head_b"],
                         params["head_w"], params["head_wb"])
    return logits[:, :num_classes].reshape(B, N, num_classes)


# ----------------------------------------------------------------------------
# Main
# ----------------------------------------------------------------------------

if __name__ == "__main__":
    INPUT_DIM = 16
    ATTN_DIM = 32
    NUM_CLASSES = 5
    DEPTH = 2
    HEADS = 4
    DIM_HEAD = 8
    MLP_DIM = 64
    B, N = 2, 8

    key = jax.random.PRNGKey(0)
    kx, kp = jax.random.split(key)
    x = jax.random.normal(kx, (B, N, INPUT_DIM), dtype=jnp.float32)

    params = init_params(kp, input_dim=INPUT_DIM, attn_dim=ATTN_DIM,
                         num_classes=NUM_CLASSES, depth=DEPTH, heads=HEADS,
                         dim_head=DIM_HEAD, mlp_dim=MLP_DIM)

    out = simple_vit_forward(x, params, heads=HEADS, dim_head=DIM_HEAD,
                             num_classes=NUM_CLASSES)
    out = jax.block_until_ready(out)
    assert out.shape == (B, N, NUM_CLASSES), out.shape
    assert bool(jnp.all(jnp.isfinite(out)))
    print("KERNEL_OK")
</pallas_src>

<mosaic_0001>
module attributes {stable_mosaic.version = 11 : i64} {
  func.func @_embed_kernel(%arg0: i32, %arg1: i32, %arg2: memref<1x8x16xf32, #tpu.memory_space<vmem>>, %arg3: memref<1x16xf32, #tpu.memory_space<vmem>>, %arg4: memref<1x16xf32, #tpu.memory_space<vmem>>, %arg5: memref<16x32xbf16, #tpu.memory_space<vmem>>, %arg6: memref<1x32xf32, #tpu.memory_space<vmem>>, %arg7: memref<1x32xf32, #tpu.memory_space<vmem>>, %arg8: memref<1x32xf32, #tpu.memory_space<vmem>>, %arg9: memref<8x32xf32, #tpu.memory_space<vmem>>, %arg10: memref<1x8x32xf32, #tpu.memory_space<vmem>>) attributes {dimension_semantics = [#tpu.dimension_semantics<parallel>, #tpu.dimension_semantics<parallel>], iteration_bounds = array<i64: 2, 1>, scalar_prefetch = 0 : i64, scratch_operands = 0 : i64, tpu.core_type = #tpu.core_type<tc>, window_params = [{transform_indices = @transform_0, window_bounds = array<i64: 1, 8, 16>}, {pipeline_mode = #tpu.pipeline_mode<synchronous>, transform_indices = @transform_1, window_bounds = array<i64: 1, 16>}, {pipeline_mode = #tpu.pipeline_mode<synchronous>, transform_indices = @transform_2, window_bounds = array<i64: 1, 16>}, {pipeline_mode = #tpu.pipeline_mode<synchronous>, transform_indices = @transform_3, window_bounds = array<i64: 16, 32>}, {pipeline_mode = #tpu.pipeline_mode<synchronous>, transform_indices = @transform_4, window_bounds = array<i64: 1, 32>}, {pipeline_mode = #tpu.pipeline_mode<synchronous>, transform_indices = @transform_5, window_bounds = array<i64: 1, 32>}, {pipeline_mode = #tpu.pipeline_mode<synchronous>, transform_indices = @transform_6, window_bounds = array<i64: 1, 32>}, {transform_indices = @transform_7, window_bounds = array<i64: 8, 32>}, {transform_indices = @transform_8, window_bounds = array<i64: 1, 8, 32>}]} {
    %c0 = arith.constant 0 : index
    %c0_0 = arith.constant 0 : index
    %c0_1 = arith.constant 0 : index
    %0 = vector.load %arg2[%c0, %c0_0, %c0_1] : memref<1x8x16xf32, #tpu.memory_space<vmem>>, vector<1x8x16xf32>
    %1 = vector.shape_cast %0 : vector<1x8x16xf32> to vector<8x16xf32>
    %c0_2 = arith.constant 0 : index
    %c0_3 = arith.constant 0 : index
    %2 = vector.load %arg3[%c0_2, %c0_3] : memref<1x16xf32, #tpu.memory_space<vmem>>, vector<1x16xf32>
    %c0_4 = arith.constant 0 : index
    %c0_5 = arith.constant 0 : index
    %3 = vector.load %arg4[%c0_4, %c0_5] : memref<1x16xf32, #tpu.memory_space<vmem>>, vector<1x16xf32>
    %cst = arith.constant dense<0.000000e+00> : vector<8xf32>
    %4 = vector.multi_reduction <add>, %1, %cst [1] : vector<8x16xf32> to vector<8xf32>
    %5 = vector.shape_cast %4 : vector<8xf32> to vector<8x1xf32>
    %cst_6 = arith.constant 1.600000e+01 : f32
    %6 = vector.broadcast %cst_6 : f32 to vector<8x1xf32>
    %7 = arith.divf %5, %6 : vector<8x1xf32>
    %8 = vector.broadcast %7 : vector<8x1xf32> to vector<8x16xf32>
    %9 = arith.subf %1, %8 : vector<8x16xf32>
    %10 = arith.mulf %9, %9 : vector<8x16xf32>
    %cst_7 = arith.constant dense<0.000000e+00> : vector<8xf32>
    %11 = vector.multi_reduction <add>, %10, %cst_7 [1] : vector<8x16xf32> to vector<8xf32>
    %12 = vector.shape_cast %11 : vector<8xf32> to vector<8x1xf32>
    %cst_8 = arith.constant 1.600000e+01 : f32
    %13 = vector.broadcast %cst_8 : f32 to vector<8x1xf32>
    %14 = arith.divf %12, %13 : vector<8x1xf32>
    %cst_9 = arith.constant 9.99999974E-6 : f32
    %15 = vector.broadcast %cst_9 : f32 to vector<8x1xf32>
    %16 = arith.addf %14, %15 : vector<8x1xf32>
    %17 = math.rsqrt %16 : vector<8x1xf32>
    %18 = vector.broadcast %17 : vector<8x1xf32> to vector<8x16xf32>
    %19 = arith.mulf %9, %18 : vector<8x16xf32>
    %20 = vector.broadcast %2 : vector<1x16xf32> to vector<8x16xf32>
    %21 = arith.mulf %19, %20 : vector<8x16xf32>
    %22 = vector.broadcast %3 : vector<1x16xf32> to vector<8x16xf32>
    %23 = arith.addf %21, %22 : vector<8x16xf32>
    %24 = arith.truncf %23 : vector<8x16xf32> to vector<8x16xbf16>
    %c0_10 = arith.constant 0 : index
    %c0_11 = arith.constant 0 : index
    %25 = vector.load %arg5[%c0_10, %c0_11] : memref<16x32xbf16, #tpu.memory_space<vmem>>, vector<16x32xbf16>
    %cst_12 = arith.constant dense<0.000000e+00> : vector<8x32xf32>
    %26 = tpu.matmul %24, %25, %cst_12 {dimension_numbers = #tpu.dot_dimension_numbers<[1], [0], [0], [1], [0, 0, 1, 1], [], []>} : vector<8x16xbf16>, vector<16x32xbf16>, vector<8x32xf32> -> vector<8x32xf32>
    %c0_13 = arith.constant 0 : index
    %c0_14 = arith.constant 0 : index
    %27 = vector.load %arg6[%c0_13, %c0_14] : memref<1x32xf32, #tpu.memory_space<vmem>>, vector<1x32xf32>
    %28 = vector.broadcast %27 : vector<1x32xf32> to vector<8x32xf32>
    %29 = arith.addf %26, %28 : vector<8x32xf32>
    %c0_15 = arith.constant 0 : index
    %c0_16 = arith.constant 0 : index
    %30 = vector.load %arg7[%c0_15, %c0_16] : memref<1x32xf32, #tpu.memory_space<vmem>>, vector<1x32xf32>
    %c0_17 = arith.constant 0 : index
    %c0_18 = arith.constant 0 : index
    %31 = vector.load %arg8[%c0_17, %c0_18] : memref<1x32xf32, #tpu.memory_space<vmem>>, vector<1x32xf32>
    %cst_19 = arith.constant dense<0.000000e+00> : vector<8xf32>
    %32 = vector.multi_reduction <add>, %29, %cst_19 [1] : vector<8x32xf32> to vector<8xf32>
    %33 = vector.shape_cast %32 : vector<8xf32> to vector<8x1xf32>
    %cst_20 = arith.constant 3.200000e+01 : f32
    %34 = vector.broadcast %cst_20 : f32 to vector<8x1xf32>
    %35 = arith.divf %33, %34 : vector<8x1xf32>
    %36 = vector.broadcast %35 : vector<8x1xf32> to vector<8x32xf32>
    %37 = arith.subf %29, %36 : vector<8x32xf32>
    %38 = arith.mulf %37, %37 : vector<8x32xf32>
    %cst_21 = arith.constant dense<0.000000e+00> : vector<8xf32>
    %39 = vector.multi_reduction <add>, %38, %cst_21 [1] : vector<8x32xf32> to vector<8xf32>
    %40 = vector.shape_cast %39 : vector<8xf32> to vector<8x1xf32>
    %cst_22 = arith.constant 3.200000e+01 : f32
    %41 = vector.broadcast %cst_22 : f32 to vector<8x1xf32>
    %42 = arith.divf %40, %41 : vector<8x1xf32>
    %cst_23 = arith.constant 9.99999974E-6 : f32
    %43 = vector.broadcast %cst_23 : f32 to vector<8x1xf32>
    %44 = arith.addf %42, %43 : vector<8x1xf32>
    %45 = math.rsqrt %44 : vector<8x1xf32>
    %46 = vector.broadcast %45 : vector<8x1xf32> to vector<8x32xf32>
    %47 = arith.mulf %37, %46 : vector<8x32xf32>
    %48 = vector.broadcast %30 : vector<1x32xf32> to vector<8x32xf32>
    %49 = arith.mulf %47, %48 : vector<8x32xf32>
    %50 = vector.broadcast %31 : vector<1x32xf32> to vector<8x32xf32>
    %51 = arith.addf %49, %50 : vector<8x32xf32>
    %c0_24 = arith.constant 0 : index
    %c0_25 = arith.constant 0 : index
    %52 = vector.load %arg9[%c0_24, %c0_25] : memref<8x32xf32, #tpu.memory_space<vmem>>, vector<8x32xf32>
    %53 = arith.addf %51, %52 : vector<8x32xf32>
    %c0_26 = arith.constant 0 : index
    %c0_27 = arith.constant 0 : index
    %c0_28 = arith.constant 0 : index
    %54 = vector.load %arg10[%c0_26, %c0_27, %c0_28] : memref<1x8x32xf32, #tpu.memory_space<vmem>>, vector<1x8x32xf32>
    %55 = vector.shape_cast %54 : vector<1x8x32xf32> to vector<8x32xf32>
    %56 = vector.shape_cast %53 : vector<8x32xf32> to vector<1x8x32xf32>
    tpu.vector_store %arg10[%c0_26, %c0_27, %c0_28], %56 {strides = array<i32>} : memref<1x8x32xf32, #tpu.memory_space<vmem>>, vector<1x8x32xf32>,
    return
  }
  func.func @transform_0(%arg0: i32, %arg1: i32) -> (i32, i32, i32) {
    %c0_i32 = arith.constant 0 : i32
    %c0_i32_0 = arith.constant 0 : i32
    return %arg0, %arg1, %c0_i32 : i32, i32, i32
  }
  func.func @transform_1(%arg0: i32, %arg1: i32) -> (i32, i32) {
    %c0_i32 = arith.constant 0 : i32
    %c0_i32_0 = arith.constant 0 : i32
    %c0_i32_1 = arith.constant 0 : i32
    return %c0_i32, %c0_i32_0 : i32, i32
  }
  func.func @transform_2(%arg0: i32, %arg1: i32) -> (i32, i32) {
    %c0_i32 = arith.constant 0 : i32
    %c0_i32_0 = arith.constant 0 : i32
    %c0_i32_1 = arith.constant 0 : i32
    return %c0_i32, %c0_i32_0 : i32, i32
  }
  func.func @transform_3(%arg0: i32, %arg1: i32) -> (i32, i32) {
    %c0_i32 = arith.constant 0 : i32
    %c0_i32_0 = arith.constant 0 : i32
    %c0_i32_1 = arith.constant 0 : i32
    return %c0_i32, %c0_i32_0 : i32, i32
  }
  func.func @transform_4(%arg0: i32, %arg1: i32) -> (i32, i32) {
    %c0_i32 = arith.constant 0 : i32
    %c0_i32_0 = arith.constant 0 : i32
    %c0_i32_1 = arith.constant 0 : i32
    return %c0_i32, %c0_i32_0 : i32, i32
  }
  func.func @transform_5(%arg0: i32, %arg1: i32) -> (i32, i32) {
    %c0_i32 = arith.constant 0 : i32
    %c0_i32_0 = arith.constant 0 : i32
    %c0_i32_1 = arith.constant 0 : i32
    return %c0_i32, %c0_i32_0 : i32, i32
  }
  func.func @transform_6(%arg0: i32, %arg1: i32) -> (i32, i32) {
    %c0_i32 = arith.constant 0 : i32
    %c0_i32_0 = arith.constant 0 : i32
    %c0_i32_1 = arith.constant 0 : i32
    return %c0_i32, %c0_i32_0 : i32, i32
  }
  func.func @transform_7(%arg0: i32, %arg1: i32) -> (i32, i32) {
    %c0_i32 = arith.constant 0 : i32
    %c0_i32_0 = arith.constant 0 : i32
    return %arg1, %c0_i32 : i32, i32
  }
  func.func @transform_8(%arg0: i32, %arg1: i32) -> (i32, i32, i32) {
    %c0_i32 = arith.constant 0 : i32
    %c0_i32_0 = arith.constant 0 : i32
    return %arg0, %arg1, %c0_i32 : i32, i32, i32
  }
}

</mosaic_0001>

<bundles_post_ra>
// kernel: tpu_custom_call.1
= control target key start
LH: loop header
LB: loop body
LE: loop exit
PB: predicated region body
PF: predicated region fallthrough
CT: control target
= control target key end

     0   :  { %s1252_s0 = inlined_call_operand.hbm [shape: f32[2,8,16], index: 0, kind: input, shape index: {}]   ;;  %s1253_s1 = inlined_call_operand.vmem [shape: f32[1,16], index: 1, kind: input, shape index: {}]   ;;  %s1254_s2 = inlined_call_operand.vmem [shape: f32[1,16], index: 2, kind: input, shape index: {}]   ;;  %s1255_s3 = inlined_call_operand.vmem [shape: bf16[16,32], index: 3, kind: input, shape index: {}]   ;;  %s1256_s4 = inlined_call_operand.hbm [shape: f32[1,32], index: 4, kind: input, shape index: {}]   ;;  %s1257_s5 = inlined_call_operand.hbm [shape: f32[1,32], index: 5, kind: input, shape index: {}]   ;;  %s1258_s6 = inlined_call_operand.vmem [shape: f32[1,32], index: 6, kind: input, shape index: {}]   ;;  %s1259_s7 = inlined_call_operand.vmem [shape: f32[8,32], index: 7, kind: input, shape index: {}]   ;;  %s1260_s8 = inlined_call_operand.hbm [shape: f32[2,8,32], index: 8, kind: output, shape index: {}]  }
   0x1   :  { %1266 = sst [smem:[#allocation13_spill]] %s1256_s4 }
   0x2   :  { %13 = vsyncpa [#allocation3], 0 }
   0x3   :  { %15 = vsyncpa [#allocation3 + $0x1], 0 }
   0x4   :  { %16 = vsyncpa [#allocation6], 0 }
   0x5   :  { %17 = vsyncpa [#allocation4], 0 }
   0x6   :  { %19 = vsyncpa [#allocation4 + $0x1], 0  ;;  %s983_s27 = smov 0   ;;  %s985_s28 = smov 0  }
   0x7   :  { %s987_s29 = smov 0   ;;  %s989_s30 = smov 0  }
   0x8   :  { %s991_s9 = smov 0   ;;  %s993_s10 = smov 0  }
   0x9 LB: > { %s635_s11 = sadd.s32 4294967295, %s930_s10   ;;  %s636_s12 = sadd.s32 4294967294, %s930_s10   ;;  %s930_s10 = sphi %s993_s10, %s25_s10   ;;  %s926_s9 = sphi %s991_s9, %s1288_s9   ;;  %s922_s30 = sphi %s989_s30, %s1287_s30   ;;  %s918_s29 = sphi %s987_s29, %s1286_s29   ;;  %s914_s28 = sphi %s985_s28, %s1285_s28   ;;  %s910_s27 = sphi %s983_s27, %s1284_s27  }
   0xa   : > { %p59_p0 = scmp.ne.s32.totalorder %s914_s28, %s910_s27  ;;  %p1017_p1 = scmp.eq.s32.totalorder %s635_s11, 0 }
   0xb   : > { %p1021_p2 = scmp.eq.s32.totalorder %s635_s11, 1  ;;  %p243_p3 = scmp.eq.s32.totalorder %s636_s12, 1 }
   0xc   : > { %s1267_s13 = scalar_select %p1017_p1, 1, 0 }
   0xd   : > { %s1268_s14 = scalar_select %p1021_p2, 1, 0 }
   0xe   : > { %p1027_p4 = por %p1017_p1, %p59_p0  ;;  %p637_p5 = scmp.ge.s32.totalorder %s930_s10, 1 }
   0xf   : > { %p1032_p6 = por %p243_p3, %p59_p0  ;;  %p250_p7 = scmp.lt.s32.totalorder %s930_s10, 3 }
  0x10   : > { %s1269_s15 = scalar_select %p1027_p4, 1, 0 }
  0x11   : > { %s1270_s16 = scalar_select %p1032_p6, 1, 0 }
  0x12   : > { %p1037_p8 = pnand %p637_p5, %p250_p7  ;;  %s932_s18 = smov [#allocation5]  }
  0x13   : > { %1271 = sst [smem:[#allocation12_spill]] %s1270_s16  ;;  %s272_s19 = sshll.u32 %s932_s18, 4  ;;  %s273_s19 = int_to_ptr.vmem [resolvable:$true] %s272_s19 }
  0x14   : > { %s1272_s17 = scalar_select %p1037_p8, 1, 0 }
  0x15   : > { %p680_p10 = pneg %p1037_p8  ;;  %s933_s20 = smov [#allocation7]  }
  0x16   : > { %s283_s21 = sshll.u32 %s933_s20, 4  ;;  %s1274_s4 = sld [smem:[#allocation13_spill]]  ;;  %s1050_s21 = int_to_ptr.vmem [resolvable:$true] %s283_s21 }
  0x17   : > { %p1046_p11 = pnand %p680_p10, %p1017_p1 }
  0x19   : > { %p760_p13 = pneg %p1046_p11 }
  0x1c   : > { %s758_s25 = scalar_lea.hbm %s1274_s4, 16 }
  0x1d   : > { %p759_p12 = scmp.ne.s32.totalorder %s1274_s4, %s758_s25  ;;  %p765_p5 = scmp.lt.u32.totalorder %s758_s25, %s1274_s4 }
  0x1f   : > { %p761_p0 = pnand %p760_p13, %p759_p12 }
  0x21   : > { %p762_p3 = pneg %p761_p0 }
  0x23   : > { %p767_p7 = pnand %p765_p5, %p762_p3 }
  0x25   : > { %770 = shalt.err (!%p767_p7)
}
  0x26   : > { %s771_s20 = scalar_lea.vmem %s273_s19, 16  ;;  %s778_s23 = scalar_lea.vmem %s273_s19, 32 }
  0x27   : > { %p772_p10 = scmp.ne.s32.totalorder %s273_s19, %s771_s20  ;;  %p779_p1 = scmp.lt.s32.totalorder %s273_s19, %s273_s19 }
  0x28   : > { %p780_p4 = scmp.lt.s32.totalorder %s778_s23, %s771_s20 }
  0x29   : > { %p774_p9 = pnand %p772_p10, %p760_p13 }
  0x2a   : > { %p781_p8 = por %p780_p4, %p779_p1 }
  0x2b   : > { %p775_p6 = pneg %p774_p9 }
  0x2d   : > { %p782_p2 = pnand %p781_p8, %p775_p6 }
  0x2f   : > { %785 = shalt.err (!%p782_p2)
}
  0x30   : > { %683 = dma.hbm_to_vmem [thread:$0]  (!%p1046_p11), %s1274_s4, 16, %s273_s19, [#allocation6]  }
  0x31   : > { %s786_s12 = scalar_lea.hbm %s1257_s5, 16 }
  0x32   : > { %p787_p9 = scmp.ne.s32.totalorder %s1257_s5, %s786_s12  ;;  %p793_p2 = scmp.lt.u32.totalorder %s786_s12, %s1257_s5 }
  0x34   : > { %p789_p1 = pnand %p787_p9, %p760_p13 }
  0x36   : > { %p790_p4 = pneg %p789_p1 }
  0x38   : > { %p795_p6 = pnand %p793_p2, %p790_p4 }
  0x3a   : > { %798 = shalt.err (!%p795_p6)
}
  0x3b   : > { %s799_s19 = scalar_lea.vmem %s1050_s21, 16  ;;  %s806_s16 = scalar_lea.vmem %s1050_s21, 32 }
  0x3c   : > { %p800_p8 = scmp.ne.s32.totalorder %s1050_s21, %s799_s19  ;;  %p807_p3 = scmp.lt.s32.totalorder %s1050_s21, %s1050_s21 }
  0x3d   : > { %p808_p5 = scmp.lt.s32.totalorder %s806_s16, %s799_s19 }
  0x3e   : > { %p802_p12 = pnand %p800_p8, %p760_p13 }
  0x3f   : > { %p809_p7 = por %p808_p5, %p807_p3 }
  0x40   : > { %p803_p0 = pneg %p802_p12 }
  0x42   : > { %p810_p10 = pnand %p809_p7, %p803_p0 }
  0x44   : > { %813 = shalt.err (!%p810_p10)
}
  0x45   : > { %686 = dma.hbm_to_vmem [thread:$0]  (!%p1046_p11), %s1257_s5, 16, %s1050_s21, [#allocation6]  }
  0x46   : > { %s37_s25 = sadd.s32 1, %s926_s9  ;;  %s46_s11 = sadd.s32 1, %s918_s29 }
  0x47   : > { %p39_p13 = scmp.ge.s32.totalorder %s37_s25, 2  ;;  %p53_p9 = scmp.ne.s32.totalorder %s918_s29, %s914_s28 }
  0x48   : > { %p54_p1 = scmp.eq.s32.totalorder %s930_s10, 0  ;;  %p697_p4 = scmp.lt.s32.totalorder %s930_s10, 2 }
  0x49   : > { %s1290_s25 = smov (%p39_p13, %s37_s25), 0  ;;  %p1275_p6 = scmp.ne.s32.totalorder %s1268_s14, 0 }
  0x4a   : > { %p55_p2 = por %p54_p1, %p53_p9  ;;  %s41_s12 = ssub.s32 %s926_s9, %s1290_s25 }
  0x4b   : > { %p1110_p8 = por %p1275_p6, %p53_p9  ;;  %s304_s18 = sand.u32 1, %s918_s29  }
  0x4c   : > { %p44_p12 = scmp.eq.s32.totalorder %s41_s12, 0  ;;  %s642_s21 = sshll.u32 %s304_s18, 3 }
  0x4d   : > { %s643_s20 = sshll.u32 %s926_s9, 7  ;;  %s308_s14 = scalar_lea.vmem [#allocation2], %s642_s21 }
  0x4e   : > { %s1119_s23 = scalar_select %p44_p12, %s918_s29, %s46_s11  }
  0x4f   : > { %s1124_s24 = scalar_lea.hbm %s1252_s0, %s643_s20  ;;  %s316_s26 = sshll.u32 %s308_s14, 4  ;;  %s1132_s26 = int_to_ptr.vmem [resolvable:$true] %s316_s26 }
  0x50   : > { %p1128_p11 = pnand %p697_p4, %p55_p2  ;;  %s305_s11 = scalar_lea.sflag [#allocation3], %s304_s18 }
  0x51   : > { %s814_s12 = scalar_lea.hbm %s1124_s24, 128  ;;  %s819_s19 = scalar_lea.hbm %s1252_s0, 256 }
  0x52   : > { %p815_p0 = scmp.ne.s32.totalorder %s1124_s24, %s814_s12  ;;  %p816_p3 = pneg %p1128_p11 }
  0x53   : > { %p820_p10 = scmp.lt.u32.totalorder %s1124_s24, %s1252_s0  ;;  %p821_p13 = scmp.lt.u32.totalorder %s819_s19, %s814_s12 }
  0x54   : > { %p817_p5 = pnand %p816_p3, %p815_p0  ;;  %p823_p1 = scmp.lt.u32.totalorder %s814_s12, %s1124_s24 }
  0x55   : > { %p822_p9 = por %p821_p13, %p820_p10 }
  0x56   : > { %p818_p7 = pneg %p817_p5 }
  0x57   : > { %p824_p4 = por %p823_p1, %p822_p9 }
  0x59   : > { %p825_p2 = pnand %p824_p4, %p818_p7 }
  0x5b   : > { %828 = shalt.err (!%p825_p2)
}
  0x5c   : > { %s829_s18 = scalar_lea.vmem %s1132_s26, 128  ;;  %s934_s21 = smov [#allocation2]  }
  0x5d   : > { %p830_p6 = scmp.ne.s32.totalorder %s1132_s26, %s829_s18  ;;  %s834_s20 = sshll.u32 %s934_s21, 4  ;;  %s835_s20 = int_to_ptr.vmem [resolvable:$false] %s834_s20 }
  0x5e   : > { %s836_s16 = scalar_lea.vmem %s835_s20, 256  ;;  %p837_p5 = scmp.lt.s32.totalorder %s1132_s26, %s835_s20 }
  0x5f   : > { %p832_p12 = pnand %p830_p6, %p816_p3  ;;  %p838_p10 = scmp.lt.s32.totalorder %s836_s16, %s829_s18 }
  0x61   : > { %p833_p0 = pneg %p832_p12  ;;  %p839_p13 = por %p838_p10, %p837_p5 }
  0x63   : > { %p840_p9 = pnand %p839_p13, %p833_p0 }
  0x65   : > { %843 = shalt.err (!%p840_p9)
}
  0x66   : > { %690 = dma.hbm_to_vmem [thread:$0]  (!%p1128_p11), %s1124_s24, 128, %s1132_s26, %s305_s11  }
  0x67   : > { %p1278_p7 = scmp.ne.s32.totalorder %s1272_s17, 0 }
  0x68   : > { %s1162_s12 = sand.u32 (!%p1278_p7), 1, %s914_s28   ;;  %p1279_p3 = scmp.ne.s32.totalorder (!%p1278_p7), %s1269_s15, 0 }
  0x69   : > { %325 = sbr.rel (%p1278_p7) target bundleno = 975 (0x3cf), region = 52  ;;  %s645_s19 = sshll.u32 (!%p1278_p7), %s1162_s12, 3 }
  0x6a   : > { %s328_s14 = scalar_lea.sflag (!%p1278_p7), [#allocation3], %s1162_s12  ;;  %s331_s18 = scalar_lea.vmem (!%p1278_p7), [#allocation2], %s645_s19 }
  0x70   : > { %897 = dma.done.wait (%p1279_p3), %s328_s14, 128  }
  0x71   : > { %899 = vsyncadd (%p1279_p3), %s328_s14, 4294967168  ;;  %p1280_p11 = scmp.ne.s32.totalorder %s1267_s13, 0 }
  0x73   : > { %901 = dma.done.wait (%p1280_p11), [#allocation6], 32  }
  0x74   : > { %903 = vsyncadd (%p1280_p11), [#allocation6], 4294967264  ;;  %vm384_vm0 = vcmask 130048   ;;  %v381_v0 = vld [vmem:[%s331_s18] sm:$0xff]  ;;  %v935_v8 = vmov 0.0   ;;  %vm936_vm1 = vmmov 0  }
  0x75   : > { %v385_v1 = vsel %vm384_vm0, %v381_v0, 0.0  ;;  %v753_v7 = vld [vmem:[%s1255_s3] sm:$0xff]   ;;  %662 = vmatprep.subr.bf16.mxu0 %v935_v8  ;;  %664 = vmatprep.mubr.msk.bf16.mxu0 %vm936_vm1, %v935_v8  ;;  %v651_v19 = vld [vmem:[#allocation5] ss:$0 sm:$0xff]  ;;  %vm474_vm2 = vcmask 261120   ;;  %s657_s14 = sshll.u32 %s922_s30, 7 }
  0x76   : > { %386 = vadd.xlane.f32.xlu0 %v385_v1  ;;  %663 = vmatpush3.bf16.msra.mxu0 %v753_v7  ;;  %v649_v13 = vld [vmem:[%s1253_s1] ss:$0 sm:$0xff]  ;;  %v654_v35 = vld [vmem:[#allocation7] ss:$0 sm:$0xff]  ;;  %s375_s18 = scalar_lea.vmem [#allocation8], %s645_s19  ;;  %s1202_s17 = scalar_lea.hbm %s1260_s8, %s657_s14 }
  0x77   : > { %v650_v15 = vld [vmem:[%s1254_s2] ss:$0 sm:$0xff]  ;;  %s521_s4 = sshll.u32 %s375_s18, 4  ;;  %s507_s24 = scalar_lea.sflag [#allocation4], %s1162_s12  ;;  %s1204_s4 = int_to_ptr.vmem [resolvable:$true] %s521_s4 }
  0x78   : > { %v655_v37 = vld [vmem:[%s1258_s6] ss:$0 sm:$0xff]  ;;  %s844_s26 = scalar_lea.vmem %s1204_s4, 128  ;;  %s937_s30 = smov [#allocation8]  }
  0x79   : > { %v503_v39 = vld [vmem:[%s1259_s7] sm:$0xff]  ;;  %p845_p1 = scmp.ne.s32.totalorder %s1204_s4, %s844_s26  ;;  %s848_s19 = sshll.u32 %s937_s30, 4  ;;  %s849_s19 = int_to_ptr.vmem [resolvable:$false] %s848_s19 }
  0x7a   : > { %s850_s11 = scalar_lea.vmem %s849_s19, 256  ;;  %p851_p6 = scmp.lt.s32.totalorder %s1204_s4, %s849_s19 }
  0x7b   : > { %p846_p4 = pnand %p845_p1, %p1110_p8  ;;  %p852_p12 = scmp.lt.s32.totalorder %s850_s11, %s844_s26 }
  0x7d   : > { %p847_p2 = pneg %p846_p4  ;;  %p853_p0 = por %p852_p12, %p851_p6 }
  0x7f   : > { %p854_p5 = pnand %p853_p0, %p847_p2 }
 0x103   : > { %v387_v2 = vpop.xlane.xlu0 %386 }
 0x104   : > { %v389_v3 = vmul.f32 0.0625, %v387_v2 }
 0x106   : > { %v390_v4 = vsub.f32 %v381_v0, %v389_v3 }
 0x108   : > { %v391_v5 = vmul.f32 %v390_v4, %v390_v4 }
 0x10a   : > { %v392_v6 = vsel %vm384_vm0, %v391_v5, 0.0 }
 0x10b   : > { %393 = vadd.xlane.f32.xlu0 %v392_v6 }
 0x198   : > { %v394_v9 = vpop.xlane.xlu0 %393 }
 0x199   : > { %v395_v10 = vmul.f32 0.0625, %v394_v9 }
 0x19b   : > { %v396_v11 = vadd.f32 1e-05, %v395_v10 }
 0x19d   : > { %754 = vrsqrt.f32 %v396_v11 }
 0x1a7   : > { %v755_v12 = vpop.eup %754 }
 0x1a8   : > { %v398_v14 = vmul.f32 %v755_v12, %v390_v4 }
 0x1aa   : > { %v405_v16 = vmul.f32 %v649_v13, %v398_v14 }
 0x1ac   : > { %v412_v17 = vadd.f32 %v650_v15, %v405_v16 }
 0x1ae   : > { %v413_v18 = vpack.c.bf16 %v412_v17, %v412_v17 }
 0x1b0   : > { %665 = vmatmul.mubr.msk.bf16.vlgmr.msra.gmra.mrb[0].mxu0 %vm384_vm0, %v413_v18 }
 0x283   : > { %v466_v20 = vpop.f32.mrb[0].mxu0 }
 0x284   : > { %v467_v21 = vadd.f32 %v651_v19, %v466_v20  ;;  %v666_v22 = vpop.f32.mrb[1].mxu0 }
 0x285   : > { %v469_v23 = vpop.f32.mrb[2].mxu0 }
 0x286   : > { %v667_v24 = vpop.f32.mrb[3].mxu0  ;;  %v475_v25 = vsel %vm474_vm2, %v467_v21, 0.0 }
 0x287   : > { %476 = vadd.xlane.f32.xlu1 %v475_v25 }
 0x314   : > { %v477_v26 = vpop.xlane.xlu1 %476 }
 0x315   : > { %v479_v27 = vmul.f32 0.03125, %v477_v26 }
 0x317   : > { %v480_v28 = vsub.f32 %v467_v21, %v479_v27 }
 0x319   : > { %v481_v29 = vmul.f32 %v480_v28, %v480_v28 }
 0x31b   : > { %v482_v30 = vsel %vm474_vm2, %v481_v29, 0.0 }
 0x31c   : > { %483 = vadd.xlane.f32.xlu1 %v482_v30 }
 0x3a9   : > { %v484_v31 = vpop.xlane.xlu1 %483 }
 0x3aa   : > { %v485_v32 = vmul.f32 0.03125, %v484_v31 }
 0x3ac   : > { %v486_v33 = vadd.f32 1e-05, %v485_v32 }
 0x3ae   : > { %756 = vrsqrt.f32 %v486_v33 }
 0x3b8   : > { %v757_v34 = vpop.eup %756 }
 0x3b9   : > { %v488_v36 = vmul.f32 %v757_v34, %v480_v28 }
 0x3bb   : > { %v495_v38 = vmul.f32 %v654_v35, %v488_v36 }
 0x3bd   : > { %v502_v40 = vadd.f32 %v655_v37, %v495_v38 }
 0x3bf   : > { %v504_v41 = vadd.f32 %v503_v39, %v502_v40 }
 0x3c1   : > { %505 = vst.msk [vmem:[%s375_s18] sm:$0xff] %vm474_vm2, %v504_v41 }
 0x3c2   : > { %857 = shalt.err (!%p854_p5)
}
 0x3c3   : > { %s858_s12 = scalar_lea.hbm %s1202_s17, 128  ;;  %s862_s16 = scalar_lea.hbm %s1260_s8, 256 }
 0x3c4   : > { %p859_p10 = scmp.ne.s32.totalorder %s1202_s17, %s858_s12  ;;  %p863_p7 = scmp.lt.u32.totalorder %s1202_s17, %s1260_s8 }
 0x3c5   : > { %p864_p3 = scmp.lt.u32.totalorder %s862_s16, %s858_s12  ;;  %p866_p1 = scmp.lt.u32.totalorder %s858_s12, %s1202_s17 }
 0x3c6   : > { %p860_p13 = pnand %p859_p10, %p1110_p8 }
 0x3c7   : > { %p865_p11 = por %p864_p3, %p863_p7 }
 0x3c8   : > { %p861_p9 = pneg %p860_p13 }
 0x3c9   : > { %p867_p4 = por %p866_p1, %p865_p11 }
 0x3cb   : > { %p868_p2 = pnand %p867_p4, %p861_p9 }
 0x3cd   : > { %871 = shalt.err (!%p868_p2)
}
 0x3ce   : > { %678 = dma.vmem_to_hbm [thread:$0]  (%p1110_p8), %s1204_s4, 128, %s1202_s17, %s507_s24  }
 0x3cf PF: > { %s1281_s15 = sld [smem:[#allocation12_spill]]  ;;  %s533_s13 = sand.u32 1, %s910_s27  }
 0x3d0   : > { %p1283_p12 = scmp.ge.s32.totalorder %s930_s10, 2  ;;  %s534_s26 = scalar_lea.sflag [#allocation4], %s533_s13 }
 0x3d5   : > { %p1282_p6 = scmp.ne.s32.totalorder %s1281_s15, 0 }
 0x3d7   : > { %p692_p0 = pnand %p1283_p12, %p1282_p6 }
 0x3d9   : > { %905 = dma.done.wait (!%p692_p0), %s534_s26, 128  }
 0x3da   : > { %907 = vsyncadd (!%p692_p0), %s534_s26, 4294967168  ;;  %s25_s10 = sadd.s32 1, %s930_s10   ;;  %s1284_s27 = smov %s914_s28 }
 0x3db   : > { %p22_p5 = scmp.ge.s32.totalorder %s25_s10, 4   ;;  %s1285_s28 = smov %s918_s29 }
 0x3dc   : > { %s1286_s29 = smov %s1119_s23  ;;  %s1287_s30 = smov %s926_s9 }
 0x3dd   : > { %s1288_s9 = smov %s1290_s25  ;;  %24 = sbr.rel (!%p22_p5) target bundleno = 9 (0x9), region = 108 }
 0x3e4   :  { %539 = vsyncpa [#allocation3], 1 }
 0x3e5   :  { %541 = vsyncpa [#allocation3 + $0x1], 1 }
 0x3e6   :  { %542 = vsyncpa [#allocation6], 1 }
 0x3e7   :  { %543 = vsyncpa [#allocation4], 1 }
 0x3e8   :  { %545 = vsyncpa [#allocation4 + $0x1], 1 }

</bundles_post_ra>
